<compile_context>
chip_gen: v5e
topology: v5e:2x2
jax: 0.10.0
libtpu: 0.0.40
codegen_flags: <defaults>
</compile_context>

<pallas_src>
import jax
import jax.numpy as jnp
from jax.experimental import pallas as pl
from jax.experimental.pallas import tpu as pltpu


def _head_attention_kernel(xq_ref, xkv_ref, wq_ref, wkv_ref, o_ref,
                           q_ref, m_ref, l_ref, acc_ref):
    # xq_ref : (bt, nq, C) bf16   query-rows tile of x
    # xkv_ref: (bt, nk, C) bf16   key/value-rows tile of x
    # wq_ref : (C, H)  bf16       query weight (softmax scale pre-folded)
    # wkv_ref: (C, 2H) bf16       fused [W_k | W_v]
    # o_ref  : (bt, nq, H)        output tile
    # q_ref  : (bt, nq, H) bf16   cached Q tile (scratch, persists over KV axis)
    # m_ref/l_ref: (bt, nq, 1) f32  online-softmax running max / denominator
    # acc_ref: (bt, nq, H) f32    unnormalized output accumulator
    bt, nq, c = xq_ref.shape
    nk = xkv_ref.shape[1]
    h = wq_ref.shape[1]
    ki = pl.program_id(2)

    @pl.when(ki == 0)
    def _init():
        m_ref[...] = jnp.full(m_ref.shape, -jnp.inf, m_ref.dtype)
        l_ref[...] = jnp.zeros(l_ref.shape, l_ref.dtype)
        acc_ref[...] = jnp.zeros(acc_ref.shape, acc_ref.dtype)
        # Q projection once per (batch-tile, query-tile); the x_q block is
        # constant along the KV grid axis, so cache Q in VMEM scratch.
        xq2 = xq_ref[...].reshape(bt * nq, c)   # view: bt == 1 or nq % 16 == 0
        q = jnp.dot(xq2, wq_ref[...], preferred_element_type=jnp.float32)
        q_ref[...] = q.reshape(bt, nq, h).astype(jnp.bfloat16)

    # K/V projection for this KV tile: one fused (bt*nk, C) @ (C, 2H) MXU matmul.
    xkv2 = xkv_ref[...].reshape(bt * nk, c)
    kv = jnp.dot(xkv2, wkv_ref[...], preferred_element_type=jnp.float32)
    kv = kv.reshape(bt, nk, 2 * h).astype(jnp.bfloat16)
    k = kv[:, :, :h]
    v = kv[:, :, h:]

    # S = (q * scale) @ k^T  (scale folded into W_q); NT-form contraction on H.
    s = jnp.einsum("bqh,bkh->bqk", q_ref[...], k,
                   preferred_element_type=jnp.float32)        # (bt, nq, nk) f32

    # Online softmax (flash-style); normalization deferred to the final output.
    m_prev = m_ref[...]
    m_new = jnp.maximum(m_prev, jnp.max(s, axis=-1, keepdims=True))
    alpha = jnp.exp(m_prev - m_new)
    p = jnp.exp(s - m_new)                        # f32 exp (v5e EUP has no bf16)
    l_ref[...] = alpha * l_ref[...] + jnp.sum(p, axis=-1, keepdims=True)
    acc_ref[...] = alpha * acc_ref[...] + jnp.einsum(
        "bqk,bkh->bqh", p.astype(jnp.bfloat16), v,
        preferred_element_type=jnp.float32)
    m_ref[...] = m_new

    # Dropout: nn.Dropout is identity in eval mode; inference semantics here.
    # TODO(synk): training-mode dropout needs pltpu.prng_seed/prng_random_bits masking of p.

    @pl.when(ki == pl.num_programs(2) - 1)
    def _finalize():
        # Exact normalization on the small (bt, nq, H) accumulator (deferred
        # from the (nq, nk) matrix -> ~nk/H fewer VALU multiplies per row).
        o_ref[...] = (acc_ref[...] / l_ref[...]).astype(o_ref.dtype)


def _largest_divisor_at_most(n, cap):
    for d in range(min(n, cap), 0, -1):
        if n % d == 0:
            return d
    return 1


def _pick_seq_tile(n, cap):
    """Largest divisor of n that is <= cap and 8-aligned, or n itself if n <= cap."""
    if n <= cap:
        return n
    for d in range(cap, 7, -1):
        if n % d == 0 and d % 8 == 0:
            return d
    return n  # no well-aligned divisor: fall back to the full sequence


def _pick_tiles(B, N, target_rows=256, max_rows=2048):
    """~256-row MXU fills (v6e/v7x), KV tiles bounding the softmax block for
    v7x's 64 MiB VMEM, and >= 2 'parallel' grid steps when possible (megacore)."""
    nq = _pick_seq_tile(N, 256)
    nk = _pick_seq_tile(N, 512)
    bt = 1
    if nq % 16 == 0 and nk % 16 == 0:
        # Merging (bt, nq) in the kernel stays a layout-preserving view
        # (bf16 sublane tile = 16), so batching rows toward the MXU is free.
        for d in range(1, B + 1):
            if B % d == 0 and d * nq <= max_rows:
                bt = d
                if d * nq >= target_rows:
                    break
        # v7x has 2 TensorCores: keep >= 2 parallel grid steps when possible.
        while bt > 1 and (B // bt) * (N // nq) < 2:
            bt = _largest_divisor_at_most(B, bt - 1)
    return bt, nq, nk


def _vmem_limit_bytes(bt, nq, nk, C, H, out_itemsize):
    bf16, f32 = 2, 4
    # Double-buffered pipeline buffers (inputs + output tile).
    est = 2 * (bt * nq * C * bf16            # x_q tile
               + bt * nk * C * bf16          # x_kv tile
               + C * H * bf16                # W_q
               + C * 2 * H * bf16            # W_kv
               + bt * nq * H * out_itemsize)  # output tile
    # Scratch accumulators (q cache, m, l, acc).
    est += bt * nq * (2 * f32 + H * (f32 + bf16))
    # Compiler temporaries: kv f32, s/p (bt, nq, nk) f32, misc.
    est += bt * nk * 2 * H * f32 + 3 * bt * nq * nk * f32
    est = 2 * est + (8 << 20)                # headroom for spills / relayouts
    try:
        phys = int(pltpu.get_tpu_info().vmem_capacity_bytes)
    except Exception:
        phys = 64 << 20                      # conservative: v7x per-core VMEM
    return int(min(max(est, 32 << 20), phys * 3 // 4))


def head_attention(x, w_q, w_k, w_v, scale=None, *, out_dtype=None,
                   batch_tile=None, q_tile=None, kv_tile=None):
    """x: (B, N, C); w_*: (C, H). Returns (B, N, H) in out_dtype (default x.dtype).

    Single-head attention: softmax((x W_q) (x W_k)^T * scale) @ (x W_v).
    Set out_dtype=jnp.bfloat16 on v5e to halve the lane-sparse output stores.
    """
    B, N, C = x.shape
    H = w_q.shape[1]
    if scale is None:
        scale = float(H) ** -0.5
    out_dtype = x.dtype if out_dtype is None else out_dtype

    # Host-side prep: scale folded into W_q, [W_k | W_v] fused, bf16 MXU operands.
    w_q_s = (w_q * scale).astype(jnp.bfloat16)
    w_kv = jnp.concatenate([w_k, w_v], axis=1).astype(jnp.bfloat16)
    x_bf = x.astype(jnp.bfloat16)

    bt_d, nq_d, nk_d = _pick_tiles(B, N)
    bt = batch_tile if batch_tile is not None else bt_d
    nq = q_tile if q_tile is not None else nq_d
    nk = kv_tile if kv_tile is not None else nk_d
    assert B % bt == 0 and N % nq == 0 and N % nk == 0, (B, N, bt, nq, nk)

    grid = (B // bt, N // nq, N // nk)

    return pl.pallas_call(
        _head_attention_kernel,
        out_shape=jax.ShapeDtypeStruct((B, N, H), out_dtype),
        grid_spec=pltpu.PrefetchScalarGridSpec(
            num_scalar_prefetch=0,
            grid=grid,
            in_specs=[
                pl.BlockSpec((bt, nq, C), lambda b, qi, ki: (b, qi, 0)),   # x (query rows)
                pl.BlockSpec((bt, nk, C), lambda b, qi, ki: (b, ki, 0)),   # x (KV rows)
                pl.BlockSpec((C, H), lambda b, qi, ki: (0, 0)),            # W_q (scaled)
                pl.BlockSpec((C, 2 * H), lambda b, qi, ki: (0, 0)),        # [W_k | W_v]
            ],
            out_specs=pl.BlockSpec((bt, nq, H), lambda b, qi, ki: (b, qi, 0)),
            scratch_shapes=[
                pltpu.VMEM((bt, nq, H), jnp.bfloat16),   # cached Q tile
                pltpu.VMEM((bt, nq, 1), jnp.float32),    # running max m
                pltpu.VMEM((bt, nq, 1), jnp.float32),    # running denom l
                pltpu.VMEM((bt, nq, H), jnp.float32),    # output accumulator
            ],
        ),
        compiler_params=pltpu.CompilerParams(
            dimension_semantics=("parallel", "parallel", "arbitrary"),
            vmem_limit_bytes=_vmem_limit_bytes(
                bt, nq, nk, C, H, jnp.dtype(out_dtype).itemsize),
        ),
    )(x_bf, x_bf, w_q_s, w_kv)


def head_attention_reference(x, w_q, w_k, w_v, scale):
    q = x @ w_q
    k = x @ w_k
    v = x @ w_v
    attn = (q @ jnp.swapaxes(k, -2, -1)) * scale
    attn = jax.nn.softmax(attn, axis=-1)
    return attn @ v


if __name__ == "__main__":
    # Small shapes consistent with the module: B=2, seq N=8, n_embd C=32, size_head H=16.
    B, N, C, H = 2, 8, 32, 16
    scale = float(H) ** -0.5

    key = jax.random.PRNGKey(0)
    kx, kq, kk, kv = jax.random.split(key, 4)

    x = jax.random.normal(kx, (B, N, C), dtype=jnp.float32)
    # Deterministic parameter init (nn.Linear default-ish uniform scale), bias=False.
    bound = 1.0 / (C ** 0.5)
    w_q = jax.random.uniform(kq, (C, H), jnp.float32, -bound, bound)
    w_k = jax.random.uniform(kk, (C, H), jnp.float32, -bound, bound)
    w_v = jax.random.uniform(kv, (C, H), jnp.float32, -bound, bound)

    out = head_attention(x, w_q, w_k, w_v, scale=scale)
    out = jax.block_until_ready(out)

    ref = head_attention_reference(x, w_q, w_k, w_v, scale)
    assert out.shape == (B, N, H), out.shape
    # bf16 MXU operands justify a relaxed tolerance vs the f32 reference.
    max_err = float(jnp.max(jnp.abs(out - ref)))
    assert max_err < 5e-2, f"max abs err {max_err}"

    print("KERNEL_OK")
</pallas_src>

<mosaic_0001>
module attributes {stable_mosaic.version = 11 : i64} {
  func.func @_head_attention_kernel(%arg0: i32, %arg1: i32, %arg2: i32, %arg3: memref<1x8x32xbf16, #tpu.memory_space<vmem>>, %arg4: memref<1x8x32xbf16, #tpu.memory_space<vmem>>, %arg5: memref<32x16xbf16, #tpu.memory_space<vmem>>, %arg6: memref<32x32xbf16, #tpu.memory_space<vmem>>, %arg7: memref<1x8x16xf32, #tpu.memory_space<vmem>>, %arg8: memref<1x8x16xbf16, #tpu.memory_space<vmem>>, %arg9: memref<1x8x1xf32, #tpu.memory_space<vmem>>, %arg10: memref<1x8x1xf32, #tpu.memory_space<vmem>>, %arg11: memref<1x8x16xf32, #tpu.memory_space<vmem>>) attributes {dimension_semantics = [#tpu.dimension_semantics<parallel>, #tpu.dimension_semantics<parallel>, #tpu.dimension_semantics<arbitrary>], iteration_bounds = array<i64: 2, 1, 1>, scalar_prefetch = 0 : i64, scratch_operands = 4 : i64, tpu.core_type = #tpu.core_type<tc>, window_params = [{transform_indices = @transform_0, window_bounds = array<i64: 1, 8, 32>}, {transform_indices = @transform_1, window_bounds = array<i64: 1, 8, 32>}, {pipeline_mode = #tpu.pipeline_mode<synchronous>, transform_indices = @transform_2, window_bounds = array<i64: 32, 16>}, {pipeline_mode = #tpu.pipeline_mode<synchronous>, transform_indices = @transform_3, window_bounds = array<i64: 32, 32>}, {transform_indices = @transform_4, window_bounds = array<i64: 1, 8, 16>}]} {
    %c0_i32 = arith.constant 0 : i32
    %0 = arith.cmpi eq, %arg2, %c0_i32 : i32
    %1 = arith.extui %0 : i1 to i32
    %c0_i32_0 = arith.constant 0 : i32
    %2 = arith.cmpi ne, %1, %c0_i32_0 : i32
    scf.if %2 {
      %cst_32 = arith.constant 0xFF800000 : f32
      %39 = vector.broadcast %cst_32 : f32 to vector<1x8x1xf32>
      %c0_33 = arith.constant 0 : index
      %c0_34 = arith.constant 0 : index
      %c0_35 = arith.constant 0 : index
      %40 = vector.load %arg9[%c0_33, %c0_34, %c0_35] : memref<1x8x1xf32, #tpu.memory_space<vmem>>, vector<1x8x1xf32>
      tpu.vector_store %arg9[%c0_33, %c0_34, %c0_35], %39 {strides = array<i32>} : memref<1x8x1xf32, #tpu.memory_space<vmem>>, vector<1x8x1xf32>,
      %cst_36 = arith.constant 0.000000e+00 : f32
      %41 = vector.broadcast %cst_36 : f32 to vector<1x8x1xf32>
      %c0_37 = arith.constant 0 : index
      %c0_38 = arith.constant 0 : index
      %c0_39 = arith.constant 0 : index
      %42 = vector.load %arg10[%c0_37, %c0_38, %c0_39] : memref<1x8x1xf32, #tpu.memory_space<vmem>>, vector<1x8x1xf32>
      tpu.vector_store %arg10[%c0_37, %c0_38, %c0_39], %41 {strides = array<i32>} : memref<1x8x1xf32, #tpu.memory_space<vmem>>, vector<1x8x1xf32>,
      %cst_40 = arith.constant 0.000000e+00 : f32
      %43 = vector.broadcast %cst_40 : f32 to vector<1x8x16xf32>
      %c0_41 = arith.constant 0 : index
      %c0_42 = arith.constant 0 : index
      %c0_43 = arith.constant 0 : index
      %44 = vector.load %arg11[%c0_41, %c0_42, %c0_43] : memref<1x8x16xf32, #tpu.memory_space<vmem>>, vector<1x8x16xf32>
      tpu.vector_store %arg11[%c0_41, %c0_42, %c0_43], %43 {strides = array<i32>} : memref<1x8x16xf32, #tpu.memory_space<vmem>>, vector<1x8x16xf32>,
      %c0_44 = arith.constant 0 : index
      %c0_45 = arith.constant 0 : index
      %c0_46 = arith.constant 0 : index
      %45 = vector.load %arg3[%c0_44, %c0_45, %c0_46] : memref<1x8x32xbf16, #tpu.memory_space<vmem>>, vector<1x8x32xbf16>
      %46 = vector.shape_cast %45 : vector<1x8x32xbf16> to vector<8x32xbf16>
      %c0_47 = arith.constant 0 : index
      %c0_48 = arith.constant 0 : index
      %47 = vector.load %arg5[%c0_47, %c0_48] : memref<32x16xbf16, #tpu.memory_space<vmem>>, vector<32x16xbf16>
      %cst_49 = arith.constant dense<0.000000e+00> : vector<8x16xf32>
      %48 = tpu.matmul %46, %47, %cst_49 {dimension_numbers = #tpu.dot_dimension_numbers<[1], [0], [0], [1], [0, 0, 1, 1], [], []>} : vector<8x32xbf16>, vector<32x16xbf16>, vector<8x16xf32> -> vector<8x16xf32>
      %49 = vector.shape_cast %48 : vector<8x16xf32> to vector<1x8x16xf32>
      %50 = arith.truncf %49 : vector<1x8x16xf32> to vector<1x8x16xbf16>
      %c0_50 = arith.constant 0 : index
      %c0_51 = arith.constant 0 : index
      %c0_52 = arith.constant 0 : index
      %51 = vector.load %arg8[%c0_50, %c0_51, %c0_52] : memref<1x8x16xbf16, #tpu.memory_space<vmem>>, vector<1x8x16xbf16>
      tpu.vector_store %arg8[%c0_50, %c0_51, %c0_52], %50 {strides = array<i32>} : memref<1x8x16xbf16, #tpu.memory_space<vmem>>, vector<1x8x16xbf16>,
    } else {
    }
    %c0 = arith.constant 0 : index
    %c0_1 = arith.constant 0 : index
    %c0_2 = arith.constant 0 : index
    %3 = vector.load %arg4[%c0, %c0_1, %c0_2] : memref<1x8x32xbf16, #tpu.memory_space<vmem>>, vector<1x8x32xbf16>
    %4 = vector.shape_cast %3 : vector<1x8x32xbf16> to vector<8x32xbf16>
    %c0_3 = arith.constant 0 : index
    %c0_4 = arith.constant 0 : index
    %5 = vector.load %arg6[%c0_3, %c0_4] : memref<32x32xbf16, #tpu.memory_space<vmem>>, vector<32x32xbf16>
    %cst = arith.constant dense<0.000000e+00> : vector<8x32xf32>
    %6 = tpu.matmul %4, %5, %cst {dimension_numbers = #tpu.dot_dimension_numbers<[1], [0], [0], [1], [0, 0, 1, 1], [], []>} : vector<8x32xbf16>, vector<32x32xbf16>, vector<8x32xf32> -> vector<8x32xf32>
    %7 = vector.shape_cast %6 : vector<8x32xf32> to vector<1x8x32xf32>
    %8 = arith.truncf %7 : vector<1x8x32xf32> to vector<1x8x32xbf16>
    %9 = vector.extract_strided_slice %8 {offsets = [0, 0, 0], sizes = [1, 8, 16], strides = [1, 1, 1]} : vector<1x8x32xbf16> to vector<1x8x16xbf16>
    %10 = vector.extract_strided_slice %8 {offsets = [0, 0, 16], sizes = [1, 8, 16], strides = [1, 1, 1]} : vector<1x8x32xbf16> to vector<1x8x16xbf16>
    %c0_5 = arith.constant 0 : index
    %c0_6 = arith.constant 0 : index
    %c0_7 = arith.constant 0 : index
    %11 = vector.load %arg8[%c0_5, %c0_6, %c0_7] : memref<1x8x16xbf16, #tpu.memory_space<vmem>>, vector<1x8x16xbf16>
    "tpu.trace_start"() <{level = 10 : i32, message = "bqh,bkh->bqk"}> : () -> ()
    %cst_8 = arith.constant dense<0.000000e+00> : vector<1x8x8xf32>
    %12 = tpu.matmul %11, %9, %cst_8 {dimension_numbers = #tpu.dot_dimension_numbers<[2], [2], [1], [1], [0, 0, 0, 1, 1, 1], [0], [0]>} : vector<1x8x16xbf16>, vector<1x8x16xbf16>, vector<1x8x8xf32> -> vector<1x8x8xf32>
    "tpu.trace_stop"() : () -> ()
    %c0_9 = arith.constant 0 : index
    %c0_10 = arith.constant 0 : index
    %c0_11 = arith.constant 0 : index
    %13 = vector.load %arg9[%c0_9, %c0_10, %c0_11] : memref<1x8x1xf32, #tpu.memory_space<vmem>>, vector<1x8x1xf32>
    %cst_12 = arith.constant dense<0xFF800000> : vector<1x8xf32>
    %14 = vector.multi_reduction <maximumf>, %12, %cst_12 [2] : vector<1x8x8xf32> to vector<1x8xf32>
    %15 = vector.shape_cast %14 : vector<1x8xf32> to vector<1x8x1xf32>
    %16 = arith.maximumf %13, %15 : vector<1x8x1xf32>
    %17 = arith.subf %13, %16 : vector<1x8x1xf32>
    %18 = math.exp %17 : vector<1x8x1xf32>
    %19 = vector.broadcast %16 : vector<1x8x1xf32> to vector<1x8x8xf32>
    %20 = arith.subf %12, %19 : vector<1x8x8xf32>
    %21 = math.exp %20 : vector<1x8x8xf32>
    %c0_13 = arith.constant 0 : index
    %c0_14 = arith.constant 0 : index
    %c0_15 = arith.constant 0 : index
    %22 = vector.load %arg10[%c0_13, %c0_14, %c0_15] : memref<1x8x1xf32, #tpu.memory_space<vmem>>, vector<1x8x1xf32>
    %23 = arith.mulf %18, %22 : vector<1x8x1xf32>
    %cst_16 = arith.constant dense<0.000000e+00> : vector<1x8xf32>
    %24 = vector.multi_reduction <add>, %21, %cst_16 [2] : vector<1x8x8xf32> to vector<1x8xf32>
    %25 = vector.shape_cast %24 : vector<1x8xf32> to vector<1x8x1xf32>
    %26 = arith.addf %23, %25 : vector<1x8x1xf32>
    %c0_17 = arith.constant 0 : index
    %c0_18 = arith.constant 0 : index
    %c0_19 = arith.constant 0 : index
    %27 = vector.load %arg10[%c0_17, %c0_18, %c0_19] : memref<1x8x1xf32, #tpu.memory_space<vmem>>, vector<1x8x1xf32>
    tpu.vector_store %arg10[%c0_17, %c0_18, %c0_19], %26 {strides = array<i32>} : memref<1x8x1xf32, #tpu.memory_space<vmem>>, vector<1x8x1xf32>,
    %c0_20 = arith.constant 0 : index
    %c0_21 = arith.constant 0 : index
    %c0_22 = arith.constant 0 : index
    %28 = vector.load %arg11[%c0_20, %c0_21, %c0_22] : memref<1x8x16xf32, #tpu.memory_space<vmem>>, vector<1x8x16xf32>
    %29 = vector.broadcast %18 : vector<1x8x1xf32> to vector<1x8x16xf32>
    %30 = arith.mulf %29, %28 : vector<1x8x16xf32>
    %31 = arith.truncf %21 : vector<1x8x8xf32> to vector<1x8x8xbf16>
    "tpu.trace_start"() <{level = 10 : i32, message = "bqk,bkh->bqh"}> : () -> ()
    %cst_23 = arith.constant dense<0.000000e+00> : vector<1x8x16xf32>
    %32 = tpu.matmul %31, %10, %cst_23 {dimension_numbers = #tpu.dot_dimension_numbers<[2], [1], [1], [2], [0, 0, 0, 1, 1, 2], [0], [0]>} : vector<1x8x8xbf16>, vector<1x8x16xbf16>, vector<1x8x16xf32> -> vector<1x8x16xf32>
    "tpu.trace_stop"() : () -> ()
    %33 = arith.addf %30, %32 : vector<1x8x16xf32>
    %c0_24 = arith.constant 0 : index
    %c0_25 = arith.constant 0 : index
    %c0_26 = arith.constant 0 : index
    %34 = vector.load %arg11[%c0_24, %c0_25, %c0_26] : memref<1x8x16xf32, #tpu.memory_space<vmem>>, vector<1x8x16xf32>
    tpu.vector_store %arg11[%c0_24, %c0_25, %c0_26], %33 {strides = array<i32>} : memref<1x8x16xf32, #tpu.memory_space<vmem>>, vector<1x8x16xf32>,
    %c0_27 = arith.constant 0 : index
    %c0_28 = arith.constant 0 : index
    %c0_29 = arith.constant 0 : index
    %35 = vector.load %arg9[%c0_27, %c0_28, %c0_29] : memref<1x8x1xf32, #tpu.memory_space<vmem>>, vector<1x8x1xf32>
    tpu.vector_store %arg9[%c0_27, %c0_28, %c0_29], %16 {strides = array<i32>} : memref<1x8x1xf32, #tpu.memory_space<vmem>>, vector<1x8x1xf32>,
    %c0_i32_30 = arith.constant 0 : i32
    %36 = arith.cmpi eq, %arg2, %c0_i32_30 : i32
    %37 = arith.extui %36 : i1 to i32
    %c0_i32_31 = arith.constant 0 : i32
    %38 = arith.cmpi ne, %37, %c0_i32_31 : i32
    scf.if %38 {
      %c0_32 = arith.constant 0 : index
      %c0_33 = arith.constant 0 : index
      %c0_34 = arith.constant 0 : index
      %39 = vector.load %arg11[%c0_32, %c0_33, %c0_34] : memref<1x8x16xf32, #tpu.memory_space<vmem>>, vector<1x8x16xf32>
      %c0_35 = arith.constant 0 : index
      %c0_36 = arith.constant 0 : index
      %c0_37 = arith.constant 0 : index
      %40 = vector.load %arg10[%c0_35, %c0_36, %c0_37] : memref<1x8x1xf32, #tpu.memory_space<vmem>>, vector<1x8x1xf32>
      %41 = vector.broadcast %40 : vector<1x8x1xf32> to vector<1x8x16xf32>
      %42 = arith.divf %39, %41 : vector<1x8x16xf32>
      %c0_38 = arith.constant 0 : index
      %c0_39 = arith.constant 0 : index
      %c0_40 = arith.constant 0 : index
      %43 = vector.load %arg7[%c0_38, %c0_39, %c0_40] : memref<1x8x16xf32, #tpu.memory_space<vmem>>, vector<1x8x16xf32>
      tpu.vector_store %arg7[%c0_38, %c0_39, %c0_40], %42 {strides = array<i32>} : memref<1x8x16xf32, #tpu.memory_space<vmem>>, vector<1x8x16xf32>,
    } else {
    }
    return
  }
  func.func @transform_0(%arg0: i32, %arg1: i32, %arg2: i32) -> (i32, i32, i32) {
    %c0_i32 = arith.constant 0 : i32
    %c0_i32_0 = arith.constant 0 : i32
    return %arg0, %arg1, %c0_i32 : i32, i32, i32
  }
  func.func @transform_1(%arg0: i32, %arg1: i32, %arg2: i32) -> (i32, i32, i32) {
    %c0_i32 = arith.constant 0 : i32
    %c0_i32_0 = arith.constant 0 : i32
    return %arg0, %arg2, %c0_i32 : i32, i32, i32
  }
  func.func @transform_2(%arg0: i32, %arg1: i32, %arg2: i32) -> (i32, i32) {
    %c0_i32 = arith.constant 0 : i32
    %c0_i32_0 = arith.constant 0 : i32
    %c0_i32_1 = arith.constant 0 : i32
    return %c0_i32, %c0_i32_0 : i32, i32
  }
  func.func @transform_3(%arg0: i32, %arg1: i32, %arg2: i32) -> (i32, i32) {
    %c0_i32 = arith.constant 0 : i32
    %c0_i32_0 = arith.constant 0 : i32
    %c0_i32_1 = arith.constant 0 : i32
    return %c0_i32, %c0_i32_0 : i32, i32
  }
  func.func @transform_4(%arg0: i32, %arg1: i32, %arg2: i32) -> (i32, i32, i32) {
    %c0_i32 = arith.constant 0 : i32
    %c0_i32_0 = arith.constant 0 : i32
    return %arg0, %arg1, %c0_i32 : i32, i32, i32
  }
}

</mosaic_0001>

<bundles_post_ra>
// kernel: tpu_custom_call.1
= control target key start
LH: loop header
LB: loop body
LE: loop exit
PB: predicated region body
PF: predicated region fallthrough
CT: control target
= control target key end

     0   :  { %9 = vsyncpa [#allocation7], 0  ;;  %s977_s0 = inlined_call_operand.vmem [shape: bf16[2,8,32], index: 0, kind: input, shape index: {}]   ;;  %s978_s1 = inlined_call_operand.hbm [shape: bf16[2,8,32], index: 1, kind: input, shape index: {}]   ;;  %s979_s2 = inlined_call_operand.vmem [shape: bf16[32,16], index: 2, kind: input, shape index: {}]   ;;  %s980_s3 = inlined_call_operand.vmem [shape: bf16[32,32], index: 3, kind: input, shape index: {}]   ;;  %s981_s4 = inlined_call_operand.hbm [shape: f32[2,8,16], index: 4, kind: output, shape index: {}]  }
   0x1   :  { %11 = vsyncpa [#allocation7 + $0x1], 0 }
   0x2   :  { %12 = vsyncpa [#allocation8], 0 }
   0x3   :  { %14 = vsyncpa [#allocation8 + $0x1], 0  ;;  %s827_s15 = smov 0   ;;  %s829_s16 = smov 0  }
   0x4   :  { %s831_s17 = smov 0   ;;  %s833_s18 = smov 0  }
   0x5   :  { %s835_s19 = smov 0   ;;  %s837_s20 = smov 0  }
   0x6 LB: > { %s572_s21 = sadd.s32 4294967295, %s796_s20   ;;  %s573_s22 = sadd.s32 4294967294, %s796_s20   ;;  %s796_s20 = sphi %s837_s20, %s20_s20   ;;  %s792_s19 = sphi %s835_s19, %s990_s19   ;;  %s788_s18 = sphi %s833_s18, %s989_s18   ;;  %s784_s17 = sphi %s831_s17, %s988_s17   ;;  %s780_s16 = sphi %s829_s16, %s987_s16   ;;  %s776_s15 = sphi %s827_s15, %s986_s15  }
   0x7   : > { %s39_s23 = sadd.s32 1, %s792_s19  ;;  %s76_s24 = sadd.s32 1, %s784_s17 }
   0x8   : > { %p41_p0 = scmp.ge.s32.totalorder %s39_s23, 2  ;;  %p83_p1 = scmp.ne.s32.totalorder %s784_s17, %s780_s16 }
   0x9   : > { %p84_p2 = scmp.eq.s32.totalorder %s796_s20, 0  ;;  %p89_p3 = scmp.ne.s32.totalorder %s780_s16, %s776_s15 }
   0xa   : > { %s992_s23 = smov (%p41_p0, %s39_s23), 0  ;;  %p90_p5 = scmp.eq.s32.totalorder %s572_s21, 0 }
   0xb   : > { %p868_p4 = por %p84_p2, %p83_p1  ;;  %s71_s26 = ssub.s32 %s792_s19, %s992_s23 }
   0xc   : > { %p157_p6 = scmp.eq.s32.totalorder %s572_s21, 1  ;;  %p74_p7 = scmp.eq.s32.totalorder %s71_s26, 0 }
   0xd   : > { %p874_p8 = por %p90_p5, %p89_p3  ;;  %p163_p10 = scmp.eq.s32.totalorder %s573_s22, 1 }
   0xe   : > { %p878_p9 = por %p157_p6, %p83_p1  ;;  %p575_p12 = scmp.ge.s32.totalorder %s796_s20, 2 }
   0xf   : > { %s883_s29 = scalar_select %p74_p7, %s784_s17, %s76_s24  }
  0x10   : > { %p885_p11 = por %p163_p10, %p89_p3  ;;  %p622_p13 = scmp.lt.s32.totalorder %s796_s20, 2 }
  0x11   : > { %s199_s5 = sand.u32 1, %s784_s17   ;;  %s577_s7 = sshll.u32 %s792_s19, 2 }
  0x12   : > { %s576_s6 = sshll.u32 %s199_s5, 2  ;;  %s208_s10 = scalar_lea.hbm %s978_s1, %s577_s7 }
  0x13   : > { %s203_s11 = scalar_lea.vmem [#allocation6], %s576_s6  ;;  %s210_s13 = sshll.u32 %s208_s10, 4  ;;  %s211_s13 = int_to_ptr.hbm [resolvable:$true] %s210_s13 }
  0x14   : > { %s212_s12 = sshll.u32 %s203_s11, 4  ;;  %p615_p0 = pnand %p622_p13, %p868_p4  ;;  %s213_s12 = int_to_ptr.vmem [resolvable:$true] %s212_s12 }
  0x15   : > { %p578_p1 = scmp.ge.s32.totalorder %s796_s20, 1  ;;  %p217_p2 = scmp.lt.s32.totalorder %s796_s20, 3 }
  0x16   : > { %s200_s14 = scalar_lea.sflag [#allocation7], %s199_s5 }
  0x17   : > { %617 = dma.hbm_to_vmem [thread:$0]  (!%p615_p0), %s211_s13, 64, %s213_s12, %s200_s14  }
  0x18   : > { %p218_p3 = pnand %p578_p1, %p217_p2 }
  0x19   : > { %s901_s21 = sand.u32 (!%p218_p3), 1, %s780_s16  }
  0x1a   : > { %221 = sbr.rel (%p218_p3) target bundleno = 797 (0x31d), region = 36  ;;  %s579_s22 = sshll.u32 (!%p218_p3), %s901_s21, 2 }
  0x1b   : > { %s224_s24 = scalar_lea.sflag (!%p218_p3), [#allocation7], %s901_s21  ;;  %s227_s26 = scalar_lea.vmem (!%p218_p3), [#allocation6], %s579_s22 }
  0x1f   : > { %767 = dma.done.wait (%p874_p8), %s224_s24, 64  }
  0x20   : > { %769 = vsyncadd (%p874_p8), %s224_s24, 4294967232  ;;  %p260_p4 = scmp.lt.s32.totalorder %s788_s18, 1  ;;  %v607_v0 = vld [vmem:[%s979_s2 + $0x8] sm:$0xff]  ;;  %v606_v2 = vld [vmem:[%s979_s2] sm:$0xff]  ;;  %vm294_vm0 = vcmask 261120   ;;  %vm275_vm1 = vcmask 130048  }
  0x21   : > { %v609_v1 = vld [vmem:[%s980_s3 + $0x8] sm:$0xff]  ;;  %304 = vmatpush.bf16.msra.mxu0 %v607_v0  ;;  %v608_v3 = vld [vmem:[%s980_s3] sm:$0xff]  ;;  %v798_v6 = vmov 0.0   ;;  %vm312_vm2 = vcmask 125952   ;;  %s799_s24 = smov 112   ;;  %vm272_vm3 = vcmask 7168  }
  0x22   : > { %s261_s25 = scalar_select %p260_p4, %s788_s18, 1  ;;  %341 = vmatpush.bf16.msra.mxu1 %v609_v1  ;;  %v314_v5 = vld [vmem:[%s227_s26] sm:$0xf]  ;;  %276 = vst.msk [vmem:[#allocation5] sm:$0xff] %vm275_vm1, %v798_v6  ;;  %vm411_vm4 = vcmask 1043456   ;;  %v800_v17 = vmov -inf  }
  0x23   : > { %273 = vst.msk [vmem:[#allocation3] sm:$0xff] %vm272_vm3, %v800_v17  ;;  %vm371_vm5 = vcmask 64512   ;;  %v801_v23 = vmov 0   ;;  %s580_s26 = sshll.u32 %s901_s21, 3  ;;  %s734_s14 = scalar_lea.hbm %s981_s4, 16 }
  0x24   : > { %s581_s9 = sshll.u32 %s261_s25, 2  ;;  %274 = vst.msk [vmem:[#allocation4] sm:$0xff] %vm272_vm3, %v798_v6  ;;  %676 = vset.pattern.permute.xlu0 %v801_v23  ;;  %677 = vset.pattern.permute.xlu2 %v801_v23  ;;  %s603_s25 = sshll.u32 %s788_s18, 3 }
  0x25   : > { %s266_s22 = scalar_lea.vmem %s977_s0, %s581_s9  ;;  %305 = vmatpush.bf16.msra.mxu0 %v606_v2  ;;  %s469_s7 = scalar_lea.hbm %s981_s4, %s603_s25 }
  0x26   : > { %342 = vmatpush.bf16.msra.mxu1 %v608_v3  ;;  %v277_v4 = vld [vmem:[%s266_s22] sm:$0xf]  ;;  %s259_s8 = scalar_lea.vmem [#allocation9], %s580_s26  ;;  %s473_s10 = sshll.u32 %s469_s7, 4  ;;  %s474_s10 = int_to_ptr.hbm [resolvable:$true] %s473_s10 }
  0x27   : > { %s471_s9 = sshll.u32 %s259_s8, 4  ;;  %s458_s18 = scalar_lea.sflag [#allocation8], %s901_s21  ;;  %s472_s9 = int_to_ptr.vmem [resolvable:$true] %s471_s9 }
  0x28   : > { %590 = vmatmul.msk.bf16.vlgmr.msra.gmra.mxu0 %vm294_vm0, %v277_v4  ;;  %s728_s11 = sshra.s32 %s474_s10, 4  ;;  %s729_s11 = int_to_ptr.hbm [resolvable:$true] %s728_s11 }
  0x29   : > { %599 = vmatmul.msk.bf16.vlgmr.msra.gmra.mxu1 %vm294_vm0, %v314_v5  ;;  %v395_v44 = vld [vmem:[#allocation5] sm:$0xff]  ;;  %s730_s27 = scalar_lea.hbm %s729_s11, 8  ;;  %p735_p8 = scmp.lt.s32.totalorder %s729_s11, %s981_s4 }
  0x2a   : > { %v370_v24 = vld [vmem:[#allocation3] sm:$0xff]  ;;  %p731_p5 = scmp.ne.s32.totalorder %s729_s11, %s730_s27  ;;  %p736_p10 = scmp.lt.s32.totalorder %s734_s14, %s730_s27 }
  0x2b   : > { %v387_v36 = vld [vmem:[#allocation4] sm:$0xff] }
  0x2c   : > { %p732_p6 = pnand %p731_p5, %p878_p9  ;;  %p737_p13 = por %p736_p10, %p735_p8 }
  0x2e   : > { %p733_p7 = pneg %p732_p6 }
  0x30   : > { %p738_p0 = pnand %p737_p13, %p733_p7 }
  0xa5   : > { %v307_v7 = vpop.f32.mrf.mxu0 }
  0xa6   : > { %v344_v8 = vpop.f32.mrf.mxu1  ;;  %v311_v9 = vpack.c.bf16 %v307_v7, %v307_v7 }
  0xa7   : > { %v348_v10 = vpack.c.bf16 %v344_v8, %v344_v8 }
  0xa8   : > { %313 = vst.msk [vmem:[#allocation2] sm:$0xf] %vm312_vm2, %v311_v9 }
  0xa9   : > { %v355_v11 = vsel %vm275_vm1, %v348_v10, 0  ;;  %v404_v12 = vunpack.c.l.b16 %v348_v10 }
  0xaa   : > { %364 = vmatpush.bf16.xpose.msra.mxu2 %v355_v11 }
  0xab   : > { %v405_v13 = vpack.c.b16 %v404_v12, %v404_v12 }
  0xad   : > { %406 = vrot.lane.b32.xlu1 %v405_v13, %s799_s24  ;;  %v309_v14 = vpop.f32.mrf.mxu0 }
  0xae   : > { %v346_v15 = vpop.f32.mrf.mxu1 }
  0xaf   : > { %v349_v16 = vld [vmem:[#allocation2] sm:$0xf] }
  0xb1   : > { %600 = vmatmul.msk.bf16.vlgmr.msra.gmra.mxu2 %vm275_vm1, %v349_v16 }
 0x11f   : > { %v407_v18 = vpop.permute.xlu1 %406 }
 0x120   : > { %v413_v19 = vsel %vm411_vm4, %v407_v18, 0 }
 0x121   : > { %422 = vmatpush.bf16.msra.mxu3 %v413_v19 }
 0x134   : > { %v366_v20 = vpop.f32.mrf.mxu2 }
 0x135   : > { %v372_v21 = vsel %vm371_vm5, %v366_v20, -inf }
 0x136   : > { %373 = vmax.xlane.f32.xlu0 %v372_v21 }
 0x13c   : > { %v368_v22 = vpop.f32.mrf.mxu2 }
 0x1a9   : > { %v374_v25 = vpop.xlane.xlu0 %373 }
 0x1aa   : > { %v375_v26 = vmax.f32 %v370_v24, %v374_v25 }
 0x1ac   : > { %v376_v27 = vsub.f32 %v370_v24, %v375_v26  ;;  %430 = vst.msk [vmem:[#allocation3] sm:$0xff] %vm272_vm3, %v375_v26  ;;  %381 = vperm.xlu0 %676, %v375_v26  }
 0x1ae   : > { %v377_v34 = vmul.f32 1.442695, %v376_v27 }
 0x21e   : > { %v382_v28 = vpop.permute.xlu0 %381 }
 0x21f   : > { %v384_v29 = vsub.f32 %v366_v20, %v382_v28 }
 0x221   : > { %v385_v30 = vmul.f32 1.442695, %v384_v29 }
 0x223   : > { %678 = vpow2.f32 %v385_v30 }
 0x224   : > { %680 = vpow2.f32 %v377_v34 }
 0x229   : > { %v679_v31 = vpop.eup %678 }
 0x22a   : > { %v389_v32 = vsel %vm371_vm5, %v679_v31, 0.0  ;;  %v402_v33 = vpack.c.bf16 %v679_v31, %v679_v31  ;;  %v681_v35 = vpop.eup %680 }
 0x22b   : > { %390 = vadd.xlane.f32.xlu1 %v389_v32  ;;  %v388_v37 = vmul.f32 %v681_v35, %v387_v36 }
 0x22c   : > { %601 = vmatmul.msk.bf16.vlgmr.msra.gmra.mxu3 %vm371_vm5, %v402_v33 }
 0x29e   : > { %v391_v38 = vpop.xlane.xlu1 %390 }
 0x29f   : > { %v392_v39 = vadd.f32 %v391_v38, %v388_v37 }
 0x2a1   : > { %394 = vst.msk [vmem:[#allocation4] sm:$0xff] %vm272_vm3, %v392_v39 }
 0x2a8   : > { %v435_v40 = vld [vmem:[#allocation4] sm:$0xff] }
 0x2a9   : > { %438 = vperm.xlu2 %677, %v435_v40  }
 0x2af   : > { %v424_v41 = vpop.f32.mrf.mxu3 }
 0x2b1   : > { %398 = vperm.xlu2 %677, %v681_v35  }
 0x2b7   : > { %v426_v42 = vpop.f32.mrf.mxu3 }
 0x303   : > { %v439_v43 = vpop.permute.xlu2 %438 }
 0x304   : > { %682 = vrcp.f32 %v439_v43  ;;  %v452_v53 = vand.u32 2147483648, %v439_v43  ;;  %vm446_vm7 = vweird.f32 %v439_v43  ;;  %v450_v54 = vand.u32 2147483647, %v439_v43 }
 0x306   : > { %v453_v56 = vor.u32 1.1754944e-38, %v452_v53  ;;  %vm451_vm9 = vcmp.eq.f32.partialorder %v450_v54, 8.507059e+37 }
 0x30a   : > { %v683_v45 = vpop.eup %682 }
 0x30b   : > { %v442_v46 = vmul.f32 %v683_v45, %v439_v43  ;;  %v399_v47 = vpop.permute.xlu2 %398  ;;  %vm447_vm6 = vweird.f32 %v683_v45 }
 0x30c   : > { %v401_v48 = vmul.f32 %v399_v47, %v395_v44  ;;  %vm448_vm8 = vmor %vm446_vm7, %vm447_vm6 }
 0x30d   : > { %v443_v49 = vsub.f32 1.0, %v442_v46 }
 0x30e   : > { %v428_v50 = vadd.f32 %v424_v41, %v401_v48 }
 0x30f   : > { %v444_v51 = vmul.f32 %v683_v45, %v443_v49 }
 0x310   : > { %429 = vst.msk [vmem:[#allocation5] sm:$0xff] %vm275_vm1, %v428_v50 }
 0x311   : > { %v445_v52 = vadd.f32 %v683_v45, %v444_v51 }
 0x313   : > { %v449_v55 = vsel %vm448_vm8, %v683_v45, %v445_v52 }
 0x314   : > { %v454_v57 = vsel %vm451_vm9, %v453_v56, %v449_v55 }
 0x317   : > { %v434_v58 = vld [vmem:[#allocation5] sm:$0xff] }
 0x318   : > { %v455_v59 = vmul.f32 %v454_v57, %v434_v58 }
 0x31a   : > { %456 = vst.msk [vmem:[%s259_s8] sm:$0xff] %vm275_vm1, %v455_v59 }
 0x31b   : > { %741 = shalt.err (!%p738_p0)
}
 0x31c   : > { %612 = dma.vmem_to_hbm [thread:$0]  (%p878_p9), %s472_s9, 128, %s474_s10, %s458_s18  }
 0x31d PF: > { %s485_s21 = sand.u32 1, %s776_s15   ;;  %p619_p1 = pnand %p575_p12, %p885_p11 }
 0x31e   : > { %s486_s26 = scalar_lea.sflag [#allocation8], %s485_s21 }
 0x31f   : > { %p620_p2 = pneg %p619_p1 }
 0x321   : > { %771 = dma.done.wait (%p620_p2), %s486_s26, 128  }
 0x322   : > { %773 = vsyncadd (%p620_p2), %s486_s26, 4294967168  ;;  %s20_s20 = sadd.s32 1, %s796_s20   ;;  %s986_s15 = smov %s780_s16 }
 0x323   : > { %p17_p3 = scmp.ge.s32.totalorder %s20_s20, 4   ;;  %s987_s16 = smov %s784_s17 }
 0x324   : > { %s988_s17 = smov %s883_s29  ;;  %s989_s18 = smov %s792_s19 }
 0x325   : > { %s990_s19 = smov %s992_s23  ;;  %19 = sbr.rel (!%p17_p3) target bundleno = 6 (0x6), region = 92 }
 0x32a   :  { %492 = vsyncpa [#allocation7], 1 }
 0x32b   :  { %494 = vsyncpa [#allocation7 + $0x1], 1 }
 0x32c   :  { %495 = vsyncpa [#allocation8], 1 }
 0x32d   :  { %497 = vsyncpa [#allocation8 + $0x1], 1 }

</bundles_post_ra>
